<compile_context>
chip_gen: v6e
topology: v6e:2x2x1
jax: 0.10.0
libtpu: 0.0.40
codegen_flags: <defaults>
</compile_context>

<pallas_src>
import functools

import jax
import jax.numpy as jnp
from jax.experimental import pallas as pl
from jax.experimental.pallas import tpu as pltpu

_TILE_TARGET_BYTES = 3 * 1024 * 1024   # per-block target (see header rationale)
_MIN_PALLAS_BYTES = 1 * 1024 * 1024    # below this, pure-jnp relabel wins


def _shuffle_copy_kernel(x_ref, o_ref):
    # Aligned path: permutation already done by BlockSpec placement.
    # x_ref: (bt, cpg, L) slab of input viewed (B, g, cpg, L) (g-dim squeezed)
    # o_ref: (bt, cpg, L) lane window of output viewed (B, cpg, g*L)
    o_ref[...] = x_ref[...]


def _shuffle_groups_kernel(x_ref, o_ref, *, groups):
    # Fallback path: x_ref (bt, groups, cpg, L) -> o_ref (bt, cpg, groups, L).
    # Full-L rows at fixed lane positions; only sublane placement changes.
    if groups <= 32:
        for gi in range(groups):          # static unroll: `groups` row copies
            o_ref[:, :, gi, :] = x_ref[:, gi, :, :]
    else:
        # Avoid huge static unrolls; let Mosaic relayout in one shot.
        o_ref[...] = jnp.swapaxes(x_ref[...], 1, 2)


def _batch_tile(B, per_batch_bytes, *, min_blocks=1, target=_TILE_TARGET_BYTES):
    """Ragged batch tile: ~target-sized blocks, >= min_blocks blocks if possible."""
    bt = max(1, min(B, target // max(per_batch_bytes, 1)))
    if min_blocks > 1 and B >= min_blocks:
        bt = min(bt, -(-B // min_blocks))   # guarantee >= min_blocks grid blocks
    return int(bt)


def channel_shuffle(x, groups=2, *, min_pallas_bytes=_MIN_PALLAS_BYTES,
                    batch_tile=None):
    B, C, L = x.shape
    assert C % groups == 0, "num_channels must be divisible by groups"
    if groups == 1:
        return x
    cpg = C // groups
    itemsize = jnp.dtype(x.dtype).itemsize
    total_bytes = B * C * L * itemsize

    if total_bytes < min_pallas_bytes:
        # Tiny tensors (the LCNet-scale case): launch/grid-step overhead
        # dominates and a pallas_call blocks XLA fusion with neighbours.
        return channel_shuffle_ref(x, groups)

    cost = pl.CostEstimate(flops=0, transcendentals=0,
                           bytes_accessed=2 * total_bytes)
    x4 = x.reshape(B, groups, cpg, L)        # free row-major relabel of (B, C, L)

    if L % 128 == 0:
        # --- Pure-DMA placement path: lane-dense, (8,128)-rule-compliant ---
        bt = batch_tile or _batch_tile(B, cpg * L * itemsize)
        out3 = pl.pallas_call(
            _shuffle_copy_kernel,
            out_shape=jax.ShapeDtypeStruct((B, cpg, groups * L), x.dtype),
            grid=(pl.cdiv(B, bt), groups),
            in_specs=[pl.BlockSpec((bt, None, cpg, L),
                                   lambda b, gi: (b, gi, 0, 0))],
            out_specs=pl.BlockSpec((bt, cpg, L),
                                   lambda b, gi: (b, 0, gi)),
            compiler_params=pltpu.CompilerParams(
                dimension_semantics=("parallel", "parallel")),
            cost_estimate=cost,
        )(x4)
        return out3.reshape(B, C, L)         # free relabel back

    # --- Fallback path (L not a multiple of 128) ---
    # Full-extent minor blocks; 4-D output so every store writes full-L rows at
    # lane offset 0 of its own row (no unaligned gi*L lane offsets).
    # TODO(synk): additionally tile cpg (in multiples of 8) if a single batch
    # slab ever exceeds the VMEM block budget on this path.
    bt = batch_tile or _batch_tile(B, C * L * itemsize, min_blocks=2)
    kernel = functools.partial(_shuffle_groups_kernel, groups=groups)
    out4 = pl.pallas_call(
        kernel,
        out_shape=jax.ShapeDtypeStruct((B, cpg, groups, L), x.dtype),
        grid=(pl.cdiv(B, bt),),
        in_specs=[pl.BlockSpec((bt, groups, cpg, L), lambda b: (b, 0, 0, 0))],
        out_specs=pl.BlockSpec((bt, cpg, groups, L), lambda b: (b, 0, 0, 0)),
        compiler_params=pltpu.CompilerParams(dimension_semantics=("parallel",)),
        cost_estimate=cost,
    )(x4)
    return out4.reshape(B, C, L)             # free row-major relabel


def channel_shuffle_ref(x, groups=2):
    # Pure-JAX reference mirroring the PyTorch view/transpose/view chain.
    B, C, L = x.shape
    cpg = C // groups
    return x.reshape(B, groups, cpg, L).transpose(0, 2, 1, 3).reshape(B, C, L)


if __name__ == "__main__":
    key = jax.random.PRNGKey(0)

    # 1) LCNet-scale shape (B=2, C=4, L=16).  Default wrapper takes the
    #    small-tensor bail-out; then force the Pallas fallback path once so the
    #    kernel actually runs on TPU (unaligned-L path, 2 batch blocks).
    B, C, L = 2, 4, 16
    x = jax.random.normal(key, (B, C, L), dtype=jnp.float32)
    ref = channel_shuffle_ref(x, groups=2)

    out_small = jax.block_until_ready(channel_shuffle(x, groups=2))
    assert out_small.shape == (B, C, L) and out_small.dtype == x.dtype
    assert jnp.array_equal(out_small, ref), "bail-out path mismatch"

    out_fb = jax.block_until_ready(
        channel_shuffle(x, groups=2, min_pallas_bytes=0, batch_tile=1))
    assert out_fb.shape == (B, C, L) and out_fb.dtype == x.dtype
    assert jnp.array_equal(out_fb, ref), "Pallas fallback path mismatch"

    # 2) Lane-aligned shape (L=128): pure-DMA placement path with a ragged
    #    batch grid (B=3, batch_tile=2 -> masked partial last block).
    B2, C2, L2 = 3, 8, 128
    x2 = jax.random.normal(jax.random.PRNGKey(0), (B2, C2, L2), dtype=jnp.float32)
    out2 = jax.block_until_ready(
        channel_shuffle(x2, groups=2, min_pallas_bytes=0, batch_tile=2))
    ref2 = channel_shuffle_ref(x2, groups=2)
    assert out2.shape == (B2, C2, L2) and out2.dtype == x2.dtype
    assert jnp.array_equal(out2, ref2), "Pallas DMA-placement path mismatch"

    print("KERNEL_OK")
</pallas_src>

<mosaic_0001>
module attributes {stable_mosaic.version = 11 : i64} {
  func.func @_shuffle_groups_kernel(%arg0: i32, %arg1: memref<1x2x2x16xf32, #tpu.memory_space<vmem>>, %arg2: memref<1x2x2x16xf32, #tpu.memory_space<vmem>>) attributes {dimension_semantics = [#tpu.dimension_semantics<parallel>], iteration_bounds = array<i64: 2>, scalar_prefetch = 0 : i64, scratch_operands = 0 : i64, tpu.core_type = #tpu.core_type<tc>, window_params = [{transform_indices = @transform_0, window_bounds = array<i64: 1, 2, 2, 16>}, {transform_indices = @transform_1, window_bounds = array<i64: 1, 2, 2, 16>}]} {
    %c0 = arith.constant 0 : index
    %c0_0 = arith.constant 0 : index
    %c0_1 = arith.constant 0 : index
    %c0_2 = arith.constant 0 : index
    %0 = vector.load %arg1[%c0, %c0_0, %c0_1, %c0_2] : memref<1x2x2x16xf32, #tpu.memory_space<vmem>>, vector<1x1x2x16xf32>
    %1 = vector.shape_cast %0 : vector<1x1x2x16xf32> to vector<1x2x16xf32>
    %c0_3 = arith.constant 0 : index
    %c0_4 = arith.constant 0 : index
    %c0_5 = arith.constant 0 : index
    %c0_6 = arith.constant 0 : index
    %2 = vector.load %arg2[%c0_3, %c0_4, %c0_5, %c0_6] : memref<1x2x2x16xf32, #tpu.memory_space<vmem>>, vector<1x2x1x16xf32>
    %3 = vector.shape_cast %2 : vector<1x2x1x16xf32> to vector<1x2x16xf32>
    %4 = vector.shape_cast %1 : vector<1x2x16xf32> to vector<1x2x1x16xf32>
    tpu.vector_store %arg2[%c0_3, %c0_4, %c0_5, %c0_6], %4 {strides = array<i32>} : memref<1x2x2x16xf32, #tpu.memory_space<vmem>>, vector<1x2x1x16xf32>,
    %c0_7 = arith.constant 0 : index
    %c1 = arith.constant 1 : index
    %c0_8 = arith.constant 0 : index
    %c0_9 = arith.constant 0 : index
    %5 = vector.load %arg1[%c0_7, %c1, %c0_8, %c0_9] : memref<1x2x2x16xf32, #tpu.memory_space<vmem>>, vector<1x1x2x16xf32>
    %6 = vector.shape_cast %5 : vector<1x1x2x16xf32> to vector<1x2x16xf32>
    %c0_10 = arith.constant 0 : index
    %c0_11 = arith.constant 0 : index
    %c1_12 = arith.constant 1 : index
    %c0_13 = arith.constant 0 : index
    %7 = vector.load %arg2[%c0_10, %c0_11, %c1_12, %c0_13] : memref<1x2x2x16xf32, #tpu.memory_space<vmem>>, vector<1x2x1x16xf32>
    %8 = vector.shape_cast %7 : vector<1x2x1x16xf32> to vector<1x2x16xf32>
    %9 = vector.shape_cast %6 : vector<1x2x16xf32> to vector<1x2x1x16xf32>
    tpu.vector_store %arg2[%c0_10, %c0_11, %c1_12, %c0_13], %9 {strides = array<i32>} : memref<1x2x2x16xf32, #tpu.memory_space<vmem>>, vector<1x2x1x16xf32>,
    return
  }
  func.func @transform_0(%arg0: i32) -> (i32, i32, i32, i32) {
    %c0_i32 = arith.constant 0 : i32
    %c0_i32_0 = arith.constant 0 : i32
    %c0_i32_1 = arith.constant 0 : i32
    %c0_i32_2 = arith.constant 0 : i32
    return %arg0, %c0_i32, %c0_i32_0, %c0_i32_1 : i32, i32, i32, i32
  }
  func.func @transform_1(%arg0: i32) -> (i32, i32, i32, i32) {
    %c0_i32 = arith.constant 0 : i32
    %c0_i32_0 = arith.constant 0 : i32
    %c0_i32_1 = arith.constant 0 : i32
    %c0_i32_2 = arith.constant 0 : i32
    return %arg0, %c0_i32, %c0_i32_0, %c0_i32_1 : i32, i32, i32, i32
  }
}

</mosaic_0001>

<bundles_post_ra>
// kernel: tpu_custom_call.1
= control target key start
LH: loop header
LB: loop body
LE: loop exit
PB: predicated region body
PF: predicated region fallthrough
CT: control target
= control target key end

     0   :  { %6 = vsyncpa [#allocation3], 0  ;;  %s619_s0 = inlined_call_operand.hbm [shape: f32[2,2,2,16], index: 0, kind: input, shape index: {}]   ;;  %s620_s1 = inlined_call_operand.hbm [shape: f32[2,2,2,16], index: 1, kind: output, shape index: {}]  }
   0x1   :  { %8 = vsyncpa [#allocation3 + $0x1], 0 }
   0x2   :  { %9 = vsyncpa [#allocation4], 0 }
   0x3   :  { %11 = vsyncpa [#allocation4 + $0x1], 0  ;;  %s461_s6 = smov 0   ;;  %s463_s7 = smov 0  }
   0x4   :  { %s465_s8 = smov 0   ;;  %s467_s9 = smov 0  }
   0x5 LB: > { %s482_s10 = sadd.s32 4294967295, %s442_s9   ;;  %s280_s11 = sadd.s32 4294967294, %s442_s9   ;;  %s442_s9 = sphi %s467_s9, %s635_s9   ;;  %s438_s8 = sphi %s465_s8, %s634_s8   ;;  %s434_s7 = sphi %s463_s7, %s633_s7   ;;  %s430_s6 = sphi %s461_s6, %s632_s6  }
   0x6   : > { %s486_s12 = sadd.s32 1, %s442_s9   ;;  %s24_s13 = sadd.s32 1, %s438_s8 }
   0x7   : > { %s21_s14 = ssub.s32 %s442_s9, %s486_s12  ;;  %p31_p0 = scmp.ne.s32.totalorder %s438_s8, %s434_s7 }
   0x8   : > { %p22_p1 = scmp.eq.s32.totalorder %s21_s14, 0  ;;  %p32_p2 = scmp.eq.s32.totalorder %s442_s9, 0 }
   0x9   : > { %p37_p3 = scmp.ne.s32.totalorder %s434_s7, %s430_s6  ;;  %p38_p4 = scmp.eq.s32.totalorder %s482_s10, 0 }
   0xa   : > { %s498_s15 = scalar_select %p22_p1, %s438_s8, %s24_s13  }
   0xb   : > { %p500_p5 = por %p32_p2, %p31_p0  ;;  %p504_p6 = por %p38_p4, %p37_p3 }
   0xc   : > { %p61_p7 = scmp.eq.s32.totalorder %s482_s10, 1  ;;  %p67_p8 = scmp.eq.s32.totalorder %s280_s11, 1 }
   0xd   : > { %s624_s17 = scalar_select %p504_p6, 1, 0 }
   0xe   : > { %p311_p10 = scmp.lt.s32.totalorder %s442_s9, 2  ;;  %p511_p11 = por %p61_p7, %p31_p0 }
   0xf   : > { %p515_p12 = por %p67_p8, %p37_p3  ;;  %s87_s20 = sand.u32 1, %s438_s8  }
  0x10   : > { %s625_s18 = scalar_select %p511_p11, 1, 0 }
  0x11   : > { %s626_s19 = scalar_select %p515_p12, 1, 0 }
  0x12   : > { %s297_s21 = sshll.u32 %s442_s9, 6  ;;  %s283_s22 = sshll.u32 %s87_s20, 2 }
  0x13   : > { %s524_s25 = scalar_lea.hbm %s619_s0, %s297_s21  ;;  %s91_s26 = scalar_lea.vmem [#allocation2], %s283_s22 }
  0x14   : > { %s98_s27 = sshll.u32 %s91_s26, 4  ;;  %p528_p13 = pnand %p311_p10, %p500_p5  ;;  %s532_s27 = int_to_ptr.vmem [resolvable:$true] %s98_s27 }
  0x15   : > { %s534_s29 = scalar_lea.sflag [#allocation3], %s87_s20  ;;  %s350_s30 = scalar_lea.hbm %s524_s25, 64 }
  0x16   : > { %p351_p0 = scmp.ne.s32.totalorder %s524_s25, %s350_s30  ;;  %p352_p1 = pneg %p528_p13 }
  0x17   : > { %s355_s4 = scalar_lea.hbm %s619_s0, 128  ;;  %p356_p4 = scmp.lt.s32.totalorder %s524_s25, %s619_s0 }
  0x18   : > { %p353_p2 = pnand %p352_p1, %p351_p0  ;;  %p357_p5 = scmp.lt.s32.totalorder %s355_s4, %s350_s30 }
  0x1a   : > { %p354_p3 = pneg %p353_p2  ;;  %p358_p7 = por %p357_p5, %p356_p4 }
  0x1c   : > { %p359_p8 = pnand %p358_p7, %p354_p3 }
  0x1e   : > { %362 = shalt.err (!%p359_p8)
}
  0x1f   : > { %s363_s13 = scalar_lea.vmem %s532_s27, 64  ;;  %s444_s14 = smov [#allocation2]  }
  0x20   : > { %p364_p10 = scmp.ne.s32.totalorder %s532_s27, %s363_s13  ;;  %s368_s16 = sshll.u32 %s444_s14, 4  ;;  %s369_s16 = int_to_ptr.vmem [resolvable:$false] %s368_s16 }
  0x21   : > { %s370_s20 = scalar_lea.vmem %s369_s16, 128  ;;  %p371_p2 = scmp.lt.s32.totalorder %s532_s27, %s369_s16 }
  0x22   : > { %p366_p9 = pnand %p364_p10, %p352_p1  ;;  %p372_p12 = scmp.lt.s32.totalorder %s370_s20, %s363_s13 }
  0x24   : > { %p367_p0 = pneg %p366_p9  ;;  %p373_p11 = por %p372_p12, %p371_p2 }
  0x26   : > { %p374_p6 = pnand %p373_p11, %p367_p0 }
  0x28   : > { %377 = shalt.err (!%p374_p6)
}
  0x29   : > { %s445_s21 = smov 32   ;;  %s446_s22 = smov 2  }
  0x2a   : > { %306 = dma.hbm_to_vmem [thread:$0]  (!%p528_p13), %s524_s25, 64, %s532_s27, %s534_s29, %s445_s21, %s445_s21, %s446_s22  }
  0x2b   : > { %p286_p9 = scmp.ge.s32.totalorder %s442_s9, 1  ;;  %p106_p1 = scmp.lt.s32.totalorder %s442_s9, 3 }
  0x2d   : > { %p107_p3 = pnand %p286_p9, %p106_p1 }
  0x2e   : > { %s558_s23 = sand.u32 (!%p107_p3), 1, %s434_s7   ;;  %p628_p6 = scmp.ne.s32.totalorder (!%p107_p3), %s624_s17, 0 }
  0x2f   : > { %110 = sbr.rel (%p107_p3) target bundleno = 79 (0x4f), region = 24  ;;  %s287_s24 = sshll.u32 (!%p107_p3), %s558_s23, 2 }
  0x30   : > { %s113_s26 = scalar_lea.sflag (!%p107_p3), [#allocation3], %s558_s23  ;;  %s116_s30 = scalar_lea.vmem (!%p107_p3), [#allocation2], %s287_s24 }
  0x34   : > { %421 = dma.done.wait (%p628_p6), %s113_s26, 64  }
  0x35   : > { %423 = vsyncadd (%p628_p6), %s113_s26, 4294967232  ;;  %v148_v0 = vlaneseq  ;;  %v447_v1 = vmov 1966171168   ;;  %vm161_vm0 = vcmask 122880   ;;  %s134_s25 = scalar_lea.vmem [#allocation5], %s287_s24  ;;  %s298_s28 = sshll.u32 %s482_s10, 6 }
  0x36   : > { %v146_v2 = vunpack.c.l.s4 %v447_v1  ;;  %v289_v6 = vld.sshfl [vmem:[%s116_s30] sm:$0x11 pattern:$0x75316420]  ;;  %s207_s27 = sshll.u32 %s134_s25, 4  ;;  %s573_s2 = scalar_lea.hbm %s620_s1, %s298_s28  ;;  %s568_s27 = int_to_ptr.vmem [resolvable:$true] %s207_s27 }
  0x37   : > { %v149_v3 = vshrl.u32 %v148_v0, 7  ;;  %v144_v8 = vcombine.high %v289_v6, %v289_v6  ;;  %v291_v9 = vld.sshfl [vmem:[%s116_s30 + $0x2] sm:$0x11 pattern:$0x75316420]  ;;  %s194_s10 = scalar_lea.sflag [#allocation4], %s558_s23 }
  0x38   : > { %v147_v4 = vunpack.c.0.s8 %v146_v2  ;;  %v174_v11 = vcombine.high %v291_v9, %v291_v9  ;;  %s378_s3 = scalar_lea.vmem %s568_s27, 64  ;;  %p629_p12 = scmp.ne.s32.totalorder %s625_s18, 0 }
  0x39   : > { %p379_p11 = scmp.ne.s32.totalorder %s568_s27, %s378_s3  ;;  %s448_s4 = smov [#allocation5]  }
  0x3a   : > { %v150_v5 = vsub.s32 %v147_v4, %v149_v3  ;;  %s382_s5 = sshll.u32 %s448_s4, 4  ;;  %s383_s5 = int_to_ptr.vmem [resolvable:$false] %s382_s5 }
  0x3b   : > { %p380_p13 = pnand %p379_p11, %p629_p12  ;;  %s384_s11 = scalar_lea.vmem %s383_s5, 128 }
  0x3c   : > { %v151_v7 = vrot.slane %v289_v6, %v150_v5  ;;  %v181_v10 = vrot.slane %v291_v9, %v150_v5  ;;  %v158_v12 = vrot.slane %v144_v8, %v150_v5  ;;  %v188_v13 = vrot.slane %v174_v11, %v150_v5  ;;  %p385_p5 = scmp.lt.s32.totalorder %s568_s27, %s383_s5  ;;  %p386_p7 = scmp.lt.s32.totalorder %s384_s11, %s378_s3 }
  0x3d   : > { %p381_p4 = pneg %p380_p13 }
  0x3e   : > { %162 = vst.msk [vmem:[%s134_s25] sm:$0x1] %vm161_vm0, %v151_v7  ;;  %191 = vst.msk [vmem:[%s134_s25 + $0x1] sm:$0x1] %vm161_vm0, %v181_v10  ;;  %p387_p8 = por %p386_p7, %p385_p5 }
  0x3f   : > { %163 = vst.msk [vmem:[%s134_s25 + $0x2] sm:$0x1] %vm161_vm0, %v158_v12  ;;  %192 = vst.msk [vmem:[%s134_s25 + $0x3] sm:$0x1] %vm161_vm0, %v188_v13 }
  0x40   : > { %p388_p10 = pnand %p387_p8, %p381_p4 }
  0x42   : > { %391 = shalt.err (!%p388_p10)
}
  0x43   : > { %s392_s13 = scalar_lea.hbm %s573_s2, 64  ;;  %s396_s20 = scalar_lea.hbm %s620_s1, 128 }
  0x44   : > { %p393_p0 = scmp.ne.s32.totalorder %s573_s2, %s392_s13  ;;  %p397_p1 = scmp.lt.s32.totalorder %s573_s2, %s620_s1 }
  0x45   : > { %p398_p3 = scmp.lt.s32.totalorder %s396_s20, %s392_s13 }
  0x46   : > { %p394_p2 = pnand %p393_p0, %p629_p12 }
  0x47   : > { %p399_p6 = por %p398_p3, %p397_p1 }
  0x48   : > { %p395_p9 = pneg %p394_p2 }
  0x4a   : > { %p400_p11 = pnand %p399_p6, %p395_p9 }
  0x4c   : > { %403 = shalt.err (!%p400_p11)
}
  0x4d   : > { %s449_s24 = smov 32   ;;  %s450_s26 = smov 2  }
  0x4e   : > { %301 = dma.vmem_to_hbm [thread:$0]  (%p629_p12), %s568_s27, 64, %s573_s2, %s194_s10, %s449_s24, %s449_s24, %s450_s26  }
  0x4f PF: > { %s222_s30 = sand.u32 1, %s430_s6   ;;  %p630_p13 = scmp.ne.s32.totalorder %s626_s19, 0 }
  0x50   : > { %p631_p4 = scmp.ge.s32.totalorder %s442_s9, 2  ;;  %s223_s25 = scalar_lea.sflag [#allocation4], %s222_s30 }
  0x52   : > { %p308_p5 = pnand %p631_p4, %p630_p13 }
  0x54   : > { %p309_p7 = pneg %p308_p5 }
  0x56   : > { %425 = dma.done.wait (%p309_p7), %s223_s25, 64  }
  0x57   : > { %427 = vsyncadd (%p309_p7), %s223_s25, 4294967232  ;;  %p14_p8 = scmp.ge.s32.totalorder %s486_s12, 4   ;;  %s632_s6 = smov %s434_s7 }
  0x58   : > { %s633_s7 = smov %s438_s8  ;;  %s634_s8 = smov %s498_s15 }
  0x59   : > { %s635_s9 = smov %s486_s12  ;;  %16 = sbr.rel (!%p14_p8) target bundleno = 5 (0x5), region = 70 }
  0x5e   :  { %228 = vsyncpa [#allocation3], 1 }
  0x5f   :  { %230 = vsyncpa [#allocation3 + $0x1], 1 }
  0x60   :  { %231 = vsyncpa [#allocation4], 1 }
  0x61   :  { %233 = vsyncpa [#allocation4 + $0x1], 1 }

</bundles_post_ra>
